<compile_context>
chip_gen: v7x
topology: tpu7x:2x2x1
jax: 0.10.0
libtpu: 0.0.40
codegen_flags: <defaults>
</compile_context>

<pallas_src>
import functools
import math

import jax
import jax.numpy as jnp
from jax import lax
from jax.experimental import pallas as pl
from jax.experimental.pallas import tpu as pltpu

EMBED_T = 256


def _sinusoidal_kernel(t_ref, o_ref):
    """t_ref: (Bp, 1) f32 in VMEM; o_ref: (Bp, E) f32 in VMEM.

    angle[b, j] = t[b] * div[j] + phase[j]
      div[j]   = exp((j & ~1) * -(ln(10000)/E))     (same freq for the 2k / 2k+1 pair)
      phase[j] = (j & 1) * pi/2                      (odd columns -> cos via sin shift)
    One EUP sin pass over the tile; constants derived in-register from an iota
    (no input DMAs for them, no select).
    """
    E = o_ref.shape[1]
    j = lax.broadcasted_iota(jnp.int32, (1, E), 1)
    div = jnp.exp((j & ~1).astype(jnp.float32) * (-(math.log(10000.0) / E)))
    phase = (j & 1).astype(jnp.float32) * (math.pi / 2.0)
    o_ref[...] = jnp.sin(t_ref[...] * div + phase)


@functools.partial(jax.jit, static_argnames=("embed_dim",))
def sinusoidal_embeddings(x, t, embed_dim: int = EMBED_T):
    """Pallas equivalent of SinusoidalEmbeddings.forward(x, t) -> (B, embed_dim) f32."""
    del x  # only used for device placement in the PyTorch module
    B = t.shape[0]
    Bp = ((B + 7) // 8) * 8  # pad batch to a multiple of 8 -> sublane-dense stores

    # (Bp, 1) f32 timestep column; pad rows (t=0) are sliced off below.
    t_f = jnp.pad(t.astype(jnp.float32), (0, Bp - B))[:, None]

    out = pl.pallas_call(
        _sinusoidal_kernel,
        out_shape=jax.ShapeDtypeStruct((Bp, embed_dim), jnp.float32),
        in_specs=[pl.BlockSpec(memory_space=pltpu.MemorySpace.VMEM)],
        out_specs=pl.BlockSpec(memory_space=pltpu.MemorySpace.VMEM),
    )(t_f)
    return out[:B]


def _reference(t, time_steps: int, embed_dim: int = EMBED_T):
    """Pure-JAX reference mirroring the PyTorch __init__ + gather."""
    position = jnp.arange(time_steps, dtype=jnp.float32)[:, None]            # (T, 1)
    div = jnp.exp(jnp.arange(0, embed_dim, 2, dtype=jnp.float32)
                  * (-(math.log(10000.0) / embed_dim)))                      # (E/2,)
    emb = jnp.zeros((time_steps, embed_dim), dtype=jnp.float32)
    emb = emb.at[:, 0::2].set(jnp.sin(position * div))
    emb = emb.at[:, 1::2].set(jnp.cos(position * div))
    return emb[t]


if __name__ == "__main__":
    key = jax.random.PRNGKey(0)
    kx, kt = jax.random.split(key)

    time_steps = 1000
    B, C, H, W = 2, 4, 16, 16
    x = jax.random.normal(kx, (B, C, H, W), dtype=jnp.float32)   # NCHW, unused in compute
    t = jax.random.randint(kt, (B,), 0, time_steps, dtype=jnp.int32)

    out = sinusoidal_embeddings(x, t)
    out = jax.block_until_ready(out)

    ref = _reference(t, time_steps)
    assert out.shape == (B, EMBED_T), out.shape
    assert out.dtype == jnp.float32, out.dtype
    # 2e-4 abs tolerance: sin(a + pi/2) vs cos(a) differs by <= ~0.5 ulp of the f32
    # angle (~3e-5 for t up to 1000); everything else is bit-comparable.
    assert jnp.allclose(out, ref, atol=2e-4, rtol=1e-5), "mismatch vs reference"
    assert bool(jnp.all(jnp.abs(out) <= 1.0 + 1e-6)), "values outside [-1, 1]"

    print("KERNEL_OK")
</pallas_src>

<mosaic_0001>
module attributes {stable_mosaic.version = 11 : i64} {
  func.func @_sinusoidal_kernel(%arg0: memref<8x1xf32, #tpu.memory_space<vmem>>, %arg1: memref<8x256xf32, #tpu.memory_space<vmem>>) attributes {dimension_semantics = [], scalar_prefetch = 0 : i64, scratch_operands = 0 : i64, tpu.core_type = #tpu.core_type<tc>} {
    %0 = tpu.iota {dimensions = array<i32: 1>} : vector<1x256xi32>
    %c-2_i32 = arith.constant -2 : i32
    %1 = vector.broadcast %c-2_i32 : i32 to vector<1x256xi32>
    %2 = arith.andi %0, %1 : vector<1x256xi32>
    %3 = arith.sitofp %2 : vector<1x256xi32> to vector<1x256xf32>
    %cst = arith.constant -0.0359778926 : f32
    %4 = vector.broadcast %cst : f32 to vector<1x256xf32>
    %5 = arith.mulf %3, %4 : vector<1x256xf32>
    %6 = math.exp %5 : vector<1x256xf32>
    %c1_i32 = arith.constant 1 : i32
    %7 = vector.broadcast %c1_i32 : i32 to vector<1x256xi32>
    %8 = arith.andi %0, %7 : vector<1x256xi32>
    %9 = arith.sitofp %8 : vector<1x256xi32> to vector<1x256xf32>
    %cst_0 = arith.constant 1.57079637 : f32
    %10 = vector.broadcast %cst_0 : f32 to vector<1x256xf32>
    %11 = arith.mulf %9, %10 : vector<1x256xf32>
    %c0 = arith.constant 0 : index
    %c0_1 = arith.constant 0 : index
    %12 = vector.load %arg0[%c0, %c0_1] : memref<8x1xf32, #tpu.memory_space<vmem>>, vector<8x1xf32>
    %13 = vector.broadcast %12 : vector<8x1xf32> to vector<8x256xf32>
    %14 = vector.broadcast %6 : vector<1x256xf32> to vector<8x256xf32>
    %15 = arith.mulf %13, %14 : vector<8x256xf32>
    %16 = vector.broadcast %11 : vector<1x256xf32> to vector<8x256xf32>
    %17 = arith.addf %15, %16 : vector<8x256xf32>
    %18 = math.sin %17 : vector<8x256xf32>
    %c0_2 = arith.constant 0 : index
    %c0_3 = arith.constant 0 : index
    %19 = vector.load %arg1[%c0_2, %c0_3] : memref<8x256xf32, #tpu.memory_space<vmem>>, vector<8x256xf32>
    tpu.vector_store %arg1[%c0_2, %c0_3], %18 {strides = array<i32>} : memref<8x256xf32, #tpu.memory_space<vmem>>, vector<8x256xf32>,
    return
  }
}

</mosaic_0001>

<bundles_post_ra>
// kernel: sinusoidal_embeddings.1
= control target key start
LH: loop header
LB: loop body
LE: loop exit
PB: predicated region body
PF: predicated region fallthrough
CT: control target
= control target key end

     0   :  { %v287_v0 = vmov 0   ;;  %v8_v2 = vlaneseq  ;;  %v288_v46 = vmov 683565275   ;;  %v289_v50 = vmov 2475754826   ;;  %s375_s0 = inlined_call_operand.vmem [shape: f32[8,1], index: 0, kind: input, shape index: {}]   ;;  %s376_s1 = inlined_call_operand.vmem [shape: f32[8,256], index: 1, kind: output, shape index: {}]  }
   0x1   :  { %274 = vset.pattern.permute.xlu0 %v287_v0  ;;  %v27_v1 = vld [vmem:[%s375_s0] sm:$0xff]  ;;  %v290_v52 = vmov 2131351028   ;;  %v291_v54 = vmov 2102212464  }
   0x2   :  { %30 = vperm.xlu0 %274, %v27_v1   ;;  %v9_v3 = vand.u32 127, %v8_v2  ;;  %v292_v56 = vmov 920167782   ;;  %v293_v63 = vmov 1326507024  }
   0x4   :  { %v10_v4 = vadd.s32 128, %v9_v3  ;;  %v11_v5 = vand.u32 4294967294, %v9_v3  ;;  %v21_v13 = vand.u32 1, %v9_v3 }
   0x6   :  { %v12_v6 = vand.u32 4294967294, %v10_v4  ;;  %v13_v7 = vcvt.s32.f32 %v11_v5  ;;  %v22_v14 = vand.u32 1, %v10_v4  ;;  %v23_v15 = vcvt.s32.f32 %v21_v13 }
   0x8   :  { %v14_v8 = vcvt.s32.f32 %v12_v6  ;;  %v15_v9 = vmul.f32 -0.035977893, %v13_v7  ;;  %v24_v16 = vcvt.s32.f32 %v22_v14  ;;  %v25_v19 = vmul.f32 1.5707964, %v23_v15 }
   0xa   :  { %v16_v10 = vmul.f32 -0.035977893, %v14_v8  ;;  %v17_v11 = vmul.f32 1.442695, %v15_v9  ;;  %v26_v20 = vmul.f32 1.5707964, %v24_v16 }
   0xc   :  { %v19_v12 = vmul.f32 1.442695, %v16_v10  ;;  %275 = vpow2.f32 %v17_v11 }
   0xe   :  { %277 = vpow2.f32 %v19_v12 }
  0x16   :  { %v276_v17 = vpop.eup %275 }
  0x18   :  { %v278_v18 = vpop.eup %277 }
  0x81   :  { %v31_v21 = vpop.permute.xlu0 %30 }
  0x82   :  { %v33_v22 = vmul.f32 %v276_v17, %v31_v21  ;;  %v34_v23 = vmul.f32 %v278_v18, %v31_v21 }
  0x84   :  { %v307_v24 = vadd.f32 %v33_v22, %v25_v19  ;;  %v309_v25 = vadd.f32 %v34_v23, %v26_v20 }
  0x86   :  { %v37_v26 = vand.u32 2147483647, %v307_v24  ;;  %v40_v27 = vand.u32 2139095040, %v307_v24  ;;  %v144_v28 = vand.u32 2139095040, %v309_v25  ;;  %v141_v31 = vand.u32 2147483647, %v309_v25 }
  0x87   :  { %vm39_vm14 = vcmp.lt.s32.totalorder %v307_v24, 0 }
  0x88   :  { %v41_v29 = vshrl.u32 %v40_v27, 23  ;;  %v44_v30 = vand.u32 8388607, %v37_v26  ;;  %v145_v32 = vshrl.u32 %v144_v28, 23  ;;  %v319_v37 = vand.u32 8388607, %v141_v31 }
  0x89   :  { %vm38_vm15 = vcmp.le.f32.partialorder %v37_v26, 0.7853982 }
  0x8a   :  { %v251_v33 = vadd.s32 4294967169, %v41_v29  ;;  %v255_v34 = vadd.s32 4294967169, %v145_v32  ;;  %v45_v36 = vor.u32 8388608, %v44_v30  ;;  %v149_v44 = vor.u32 8388608, %v319_v37 }
  0x8c   :  { %v47_v35 = vadd.s32 1, %v251_v33  ;;  %v151_v38 = vadd.s32 1, %v255_v34  ;;  %v321_v43 = vshll.u32 %v45_v36, 8 }
  0x8e   :  { %vm48_vm0 = vcmp.gt.s32.totalorder %v47_v35, 0  ;;  %vm152_vm1 = vcmp.gt.s32.totalorder %v151_v38, 0 }
  0x8f   :  { %v49_v39 = vsel %vm48_vm0, %v47_v35, 0  ;;  %v153_v42 = vsel %vm152_vm1, %v151_v38, 0  ;;  %v189_v38 = vshll.u32 %v149_v44, 8  ;;  %vm143_vm0 = vcmp.lt.s32.totalorder %v309_v25, 0 }
  0x90   :  { %v50_v40 = vshrl.u32 %v49_v39, 5  ;;  %v51_v41 = vand.u32 31, %v49_v39  ;;  %v324_v48 = vshrl.u32 %v153_v42, 5  ;;  %v155_v49 = vand.u32 31, %v153_v42 }
  0x91   :  { %vm142_vm1 = vcmp.le.f32.partialorder %v141_v31, 0.7853982 }
  0x92   :  { %v52_v45 = vsub.s32 32, %v51_v41  ;;  %v54_v47 = vshll.u32 %v288_v46, %v51_v41  ;;  %v57_v51 = vshll.u32 %v289_v50, %v51_v41  ;;  %v60_v53 = vshll.u32 %v290_v52, %v51_v41 }
  0x93   :  { %v63_v55 = vshll.u32 %v291_v54, %v51_v41  ;;  %v66_v57 = vshll.u32 %v292_v56, %v51_v41  ;;  %vm69_vm2 = vcmp.lt.s32.totalorder %v50_v40, 1  ;;  %vm70_vm3 = vcmp.lt.s32.totalorder %v50_v40, 2 }
  0x94   :  { %v55_v58 = vshrl.u32 %v289_v50, %v52_v45  ;;  %v58_v59 = vshrl.u32 %v290_v52, %v52_v45  ;;  %v61_v60 = vshrl.u32 %v291_v54, %v52_v45  ;;  %v53_v61 = vshrl.u32 %v288_v46, %v52_v45 }
  0x95   :  { %v64_v62 = vshrl.u32 %v292_v56, %v52_v45  ;;  %v67_v0 = vshrl.u32 %v293_v63, %v52_v45  ;;  %v156_v4 = vsub.s32 32, %v155_v49  ;;  %vm71_vm4 = vcmp.lt.s32.totalorder %v50_v40, 3 }
  0x96   :  { %v56_v1 = vor.u32 %v55_v58, %v54_v47  ;;  %v59_v2 = vor.u32 %v58_v59, %v57_v51  ;;  %v62_v3 = vor.u32 %v61_v60, %v60_v53  ;;  %vm72_vm5 = vcmp.lt.s32.totalorder %v50_v40, 4 }
  0x97   :  { %v65_v5 = vor.u32 %v64_v62, %v63_v55  ;;  %v68_v6 = vor.u32 %v67_v0, %v66_v57  ;;  %v158_v14 = vshll.u32 %v288_v46, %v155_v49  ;;  %v159_v17 = vshrl.u32 %v289_v50, %v156_v4 }
  0x98   :  { %v73_v7 = vsel %vm69_vm2, %v53_v61, %v56_v1  ;;  %v74_v8 = vsel %vm72_vm5, %v62_v3, 2102212464  ;;  %v77_v9 = vsel %vm69_vm2, %v56_v1, %v59_v2  ;;  %v81_v10 = vsel %vm69_vm2, %v59_v2, %v62_v3 }
  0x99   :  { %v75_v11 = vsel %vm71_vm4, %v59_v2, %v74_v8  ;;  %v78_v12 = vsel %vm72_vm5, %v65_v5, 920167782  ;;  %v82_v13 = vsel %vm72_vm5, %v68_v6, 1326507024  ;;  %v161_v18 = vshll.u32 %v289_v50, %v155_v49 }
  0x9a   :  { %v79_v15 = vsel %vm71_vm4, %v62_v3, %v78_v12  ;;  %v83_v16 = vsel %vm71_vm4, %v65_v5, %v82_v13  ;;  %v76_v19 = vsel %vm70_vm3, %v73_v7, %v75_v11  ;;  %v162_v22 = vshrl.u32 %v290_v52, %v156_v4 }
  0x9b   :  { %v80_v20 = vsel %vm70_vm3, %v77_v9, %v79_v15  ;;  %v84_v21 = vsel %vm70_vm3, %v81_v10, %v83_v16  ;;  %v160_v30 = vor.u32 %v159_v17, %v158_v14  ;;  %v164_v33 = vshll.u32 %v290_v52, %v155_v49 }
  0x9c   :  { %v333_v23 = vmul.u32.u64.low %v321_v43, %v84_v21  ;;  %v334_v27 = vmul.u32.u64.high %v321_v43, %v84_v21, %v333_v23  ;;  %v337_v28 = vmul.u32.u64.low %v321_v43, %v80_v20  ;;  %v338_v29 = vmul.u32.u64.high %v321_v43, %v80_v20, %v337_v28 }
  0x9d   :  { %v163_v32 = vor.u32 %v162_v22, %v161_v18  ;;  %v165_v34 = vshrl.u32 %v291_v54, %v156_v4  ;;  %v167_v35 = vshll.u32 %v291_v54, %v155_v49  ;;  %v168_v36 = vshrl.u32 %v292_v56, %v156_v4 }
  0x9e   :  { %v171_v37 = vshrl.u32 %v293_v63, %v156_v4  ;;  %v92_v39 = vmul.u32 %v321_v43, %v76_v19  ;;  %v157_v40 = vshrl.u32 %v288_v46, %v156_v4  ;;  %v170_v42 = vshll.u32 %v292_v56, %v155_v49 }
  0x9f   :  { %v166_v41 = vor.u32 %v165_v34, %v164_v33  ;;  %vm94_vm6 = vc.u32 %v334_v27, %v337_v28  ;;  %v95_v45 = vadd.s32 1, %v338_v29  ;;  %v169_v47 = vor.u32 %v168_v36, %v167_v35 }
  0xa0   :  { %vm173_vm7 = vcmp.lt.s32.totalorder %v324_v48, 1  ;;  %v172_v50 = vor.u32 %v171_v37, %v170_v42  ;;  %vm175_vm8 = vcmp.lt.s32.totalorder %v324_v48, 3  ;;  %vm176_vm9 = vcmp.lt.s32.totalorder %v324_v48, 4 }
  0xa1   :  { %v181_v51 = vsel %vm173_vm7, %v160_v30, %v163_v32  ;;  %v96_v44 = vsel %vm94_vm6, %v95_v45, %v338_v29  ;;  %v178_v52 = vsel %vm176_vm9, %v166_v41, 2102212464  ;;  %v182_v43 = vsel %vm176_vm9, %v169_v47, 920167782 }
  0xa2   :  { %v185_v46 = vsel %vm173_vm7, %v163_v32, %v166_v41  ;;  %v97_v53 = vadd.s32 %v96_v44, %v92_v39  ;;  %vm174_vm10 = vcmp.lt.s32.totalorder %v324_v48, 2  ;;  %v183_v49 = vsel %vm175_vm8, %v166_v41, %v182_v43 }
  0xa3   :  { %v186_v54 = vsel %vm176_vm9, %v172_v50, 1326507024  ;;  %v177_v55 = vsel %vm173_vm7, %v157_v40, %v160_v30  ;;  %v179_v56 = vsel %vm175_vm8, %v163_v32, %v178_v52  ;;  %v184_v57 = vsel %vm174_vm10, %v181_v51, %v183_v49 }
  0xa4   :  { %v187_v58 = vsel %vm175_vm8, %v169_v47, %v186_v54  ;;  %v98_v59 = vadd.s32 536870912, %v97_v53  ;;  %v348_v61 = vmul.u32.u64.low %v189_v38, %v184_v57  ;;  %v349_v62 = vmul.u32.u64.high %v189_v38, %v184_v57, %v348_v61 }
  0xa5   :  { %v188_v60 = vsel %vm174_vm10, %v185_v46, %v187_v58  ;;  %v180_v2 = vsel %vm174_vm10, %v177_v55, %v179_v56  ;;  %v93_v18 = vadd.s32 %v337_v28, %v334_v27  ;;  %vm129_vm5 = vweird.f32 %v307_v24 }
  0xa6   :  { %v351_v63 = vmul.u32.u64.low %v189_v38, %v188_v60  ;;  %v352_v0 = vmul.u32.u64.high %v189_v38, %v188_v60, %v351_v63  ;;  %v99_v1 = vshrl.u32 %v98_v59, 30  ;;  %v199_v4 = vadd.s32 1, %v349_v62 }
  0xa7   :  { %v196_v48 = vmul.u32 %v189_v38, %v180_v2  ;;  %vm233_vm9 = vweird.f32 %v309_v25 }
  0xa8   :  { %v100_v3 = vshll.u32 %v99_v1, 30  ;;  %vm198_vm11 = vc.u32 %v352_v0, %v348_v61  ;;  %v197_v39 = vadd.s32 %v348_v61, %v352_v0  ;;  %v123_v28 = vsub.s32 4, %v99_v1 }
  0xa9   :  { %v200_v6 = vsel %vm198_vm11, %v199_v4, %v349_v62 }
  0xaa   :  { %v101_v5 = vsub.s32 %v97_v53, %v100_v3  ;;  %v201_v7 = vadd.s32 %v200_v6, %v196_v48  ;;  %v124_v43 = vsel %vm39_vm14, %v123_v28, %v99_v1 }
  0xab   :  { %v126_v49 = vsel %vm38_vm15, 0, %v124_v43 }
  0xac   :  { %v103_v8 = vsub.s32 0, %v101_v5  ;;  %v202_v9 = vadd.s32 536870912, %v201_v7  ;;  %v130_v58 = vadd.s32 3, %v126_v49 }
  0xae   :  { %v252_v10 = vmin.u32 %v103_v8, %v101_v5  ;;  %v203_v11 = vshrl.u32 %v202_v9, 30  ;;  %v131_v61 = vand.u32 3, %v130_v58 }
  0xb0   :  { %v105_v12 = vclz %v252_v10  ;;  %v204_v13 = vshll.u32 %v203_v11, 30  ;;  %v227_v57 = vsub.s32 4, %v203_v11  ;;  %vm136_vm2 = vcmp.eq.s32.totalorder %v131_v61, 2 }
  0xb1   :  { %vm133_vm3 = vcmp.eq.s32.totalorder %v131_v61, 0  ;;  %vm132_vm4 = vcmp.lt.s32.totalorder %v131_v61, 2 }
  0xb2   :  { %v253_v14 = vadd.s32 4294967294, %v105_v12  ;;  %v205_v15 = vsub.s32 %v201_v7, %v204_v13  ;;  %v228_v60 = vsel %vm143_vm0, %v227_v57, %v203_v11 }
  0xb3   :  { %v230_v0 = vsel %vm142_vm1, 0, %v228_v60 }
  0xb4   :  { %vm254_vm12 = vcmp.lt.s32.totalorder %v253_v14, 0  ;;  %v207_v17 = vsub.s32 0, %v205_v15  ;;  %v234_v48 = vadd.s32 3, %v230_v0 }
  0xb5   :  { %v108_v16 = vsel %vm254_vm12, 0, %v253_v14 }
  0xb6   :  { %v109_v19 = vsub.s32 32, %v108_v16  ;;  %v113_v20 = vsub.s32 4294967266, %v108_v16  ;;  %v256_v21 = vmin.u32 %v207_v17, %v205_v15  ;;  %v110_v22 = vshll.u32 %v101_v5, %v108_v16 }
  0xb7   :  { %v235_v7 = vand.u32 3, %v234_v48 }
  0xb8   :  { %v111_v23 = vshrl.u32 %v93_v18, %v109_v19  ;;  %v114_v29 = vadd.s32 127, %v113_v20  ;;  %v209_v30 = vclz %v256_v21 }
  0xb9   :  { %vm240_vm6 = vcmp.eq.s32.totalorder %v235_v7, 2  ;;  %vm237_vm7 = vcmp.eq.s32.totalorder %v235_v7, 0  ;;  %vm236_vm8 = vcmp.lt.s32.totalorder %v235_v7, 2 }
  0xba   :  { %v112_v32 = vor.u32 %v111_v23, %v110_v22  ;;  %v115_v33 = vshll.u32 %v114_v29, 23  ;;  %v257_v34 = vadd.s32 4294967294, %v209_v30 }
  0xbc   :  { %v116_v35 = vor.u32 4788187, %v115_v33  ;;  %vm258_vm13 = vcmp.lt.s32.totalorder %v257_v34, 0  ;;  %v119_v37 = vcvt.s32.f32 %v112_v32 }
  0xbd   :  { %v212_v38 = vsel %vm258_vm13, 0, %v257_v34 }
  0xbe   :  { %v117_v36 = vand.u32 2147483647, %v116_v35  ;;  %v213_v40 = vsub.s32 32, %v212_v38  ;;  %v217_v41 = vsub.s32 4294967266, %v212_v38  ;;  %v214_v42 = vshll.u32 %v205_v15, %v212_v38 }
  0xc0   :  { %v120_v27 = vmul.f32 %v119_v37, %v117_v36  ;;  %v215_v45 = vshrl.u32 %v197_v39, %v213_v40  ;;  %v218_v47 = vadd.s32 127, %v217_v41 }
  0xc2   :  { %v121_v50 = vxor.u32 2147483648, %v120_v27  ;;  %v216_v51 = vor.u32 %v215_v45, %v214_v42  ;;  %v219_v44 = vshll.u32 %v218_v47, 23 }
  0xc4   :  { %v122_v52 = vsel %vm39_vm14, %v121_v50, %v120_v27  ;;  %v220_v53 = vor.u32 4788187, %v219_v44  ;;  %v223_v55 = vcvt.s32.f32 %v216_v51 }
  0xc5   :  { %v125_v46 = vsel %vm38_vm15, %v307_v24, %v122_v52 }
  0xc6   :  { %279 = vcosq.f32 %v125_v46  ;;  %v221_v54 = vand.u32 2147483647, %v220_v53 }
  0xc7   :  { %281 = vsinq.f32 %v125_v46 }
  0xc8   :  { %v224_v56 = vmul.f32 %v223_v55, %v221_v54 }
  0xca   :  { %v225_v59 = vxor.u32 2147483648, %v224_v56 }
  0xcc   :  { %v226_v26 = vsel %vm143_vm0, %v225_v59, %v224_v56 }
  0xcd   :  { %v229_v62 = vsel %vm142_vm1, %v309_v25, %v226_v26 }
  0xce   :  { %283 = vcosq.f32 %v229_v62 }
  0xcf   :  { %285 = vsinq.f32 %v229_v62 }
  0xd0   :  { %v280_v63 = vpop.eup %279 }
  0xd1   :  { %v282_v1 = vpop.eup %281  ;;  %v137_v2 = vxor.u32 2147483648, %v280_v63 }
  0xd2   :  { %v134_v3 = vxor.u32 2147483648, %v282_v1 }
  0xd3   :  { %v138_v4 = vsel %vm136_vm2, %v137_v2, %v282_v1 }
  0xd4   :  { %v135_v5 = vsel %vm133_vm3, %v280_v63, %v134_v3 }
  0xd5   :  { %v139_v31 = vsel %vm132_vm4, %v135_v5, %v138_v4 }
  0xd6   :  { %v140_v6 = vsel %vm129_vm5, nan, %v139_v31 }
  0xd7   :  { %245 = vst [vmem:[%s376_s1] sm:$0xff] %v140_v6 }
  0xd8   :  { %v284_v8 = vpop.eup %283 }
  0xd9   :  { %v286_v9 = vpop.eup %285  ;;  %v241_v10 = vxor.u32 2147483648, %v284_v8 }
  0xda   :  { %v238_v11 = vxor.u32 2147483648, %v286_v9 }
  0xdb   :  { %v242_v12 = vsel %vm240_vm6, %v241_v10, %v286_v9 }
  0xdc   :  { %v239_v13 = vsel %vm237_vm7, %v284_v8, %v238_v11 }
  0xdd   :  { %v243_v14 = vsel %vm236_vm8, %v239_v13, %v242_v12 }
  0xde   :  { %v244_v24 = vsel %vm233_vm9, nan, %v243_v14 }
  0xdf   :  { %246 = vst [vmem:[%s376_s1 + $0x8] sm:$0xff] %v244_v24 }

</bundles_post_ra>
